<compile_context>
chip_gen: v7x
topology: tpu7x:2x2x1
jax: 0.10.0
libtpu: 0.0.40
codegen_flags: <defaults>
</compile_context>

<pallas_src>
import jax
import jax.numpy as jnp
from jax import lax
from jax.experimental import pallas as pl
from jax.experimental.pallas import tpu as pltpu


def _round_up(x, m):
    return (x + m - 1) // m * m


_VMEM_CAP = None


def _vmem_capacity_bytes():
    """Per-TensorCore VMEM capacity (generation aware), with a safe fallback."""
    global _VMEM_CAP
    if _VMEM_CAP is None:
        try:
            _VMEM_CAP = int(pltpu.get_tpu_info().vmem_capacity_bytes)
        except Exception:
            _VMEM_CAP = 64 * 1024 * 1024  # conservative (v7x per-core size)
    return _VMEM_CAP


def _vmem_budget():
    cap = _vmem_capacity_bytes()
    vmem_limit = min(cap * 3 // 4, 96 * 1024 * 1024)   # 96 MiB cap on 128 MiB parts
    ws_budget = int(vmem_limit * 0.65)                  # ~35% headroom for temps/misc
    return ws_budget, int(vmem_limit)


# ---------------------------------------------------------------------------
# VPU path (small / moderate channel counts)
# ---------------------------------------------------------------------------

def _choose_tiles_vpu(B, Cin, Cout, M):
    budget, vmem_limit = _vmem_budget()

    # Batch tile: multiple of 8 (dense sublanes) when possible, else full B.
    TB = 8 if B % 8 == 0 else B
    tb_pad = _round_up(TB, 8)

    Mp = _round_up(M, 128)          # pad to 128 lanes, NOT to TM (bounded waste)
    K = Mp // 128

    # Cap TM so the per-output-channel accumulator pair (2 x (TB, TM) f32) fits
    # comfortably in vregs across the whole Cin loop (register blocking).
    cap_blocks = max(1, min(4, 64 // tb_pad))           # <= 512 lanes for TB=8

    def ws_bytes(tm):
        a_blk = 2 * Cin * tb_pad * tm * 4
        w_blk = _round_up(3 * Cin * Cout, 8) * tm * 4
        o_blk = 2 * Cout * tb_pad * tm * 4
        return 2 * (a_blk + w_blk + o_blk)              # double-buffered blocks

    d = 1
    for cand in range(1, min(K, cap_blocks) + 1):
        if K % cand == 0 and ws_bytes(128 * cand) <= budget:
            d = cand
    TM = 128 * d
    # TODO(synk): add a Cin/Cout channel-tiling fallback when even TM=128
    # exceeds the budget (very wide channels with small min(Cin,Cout)).

    # Megacore: prefer >= 2 grid points when possible (v7x has 2 TensorCores).
    if (Mp // TM) * (B // TB) < 2 and TM == Mp and K % 2 == 0:
        TM //= 2

    return TB, TM, Mp, vmem_limit


def _make_vpu_kernel(cin, cout, tb, tm):
    """out[b,o,m] = sum_i a[b,i,m] * w[i,o,m] (complex), Karatsuba 3-mult form.

    a_ref: (2, cin, tb, tm)       re/im stacked on axis 0, f32
    w_ref: (3*cin*cout, tm)       rows: [wr | wi - wr | wr + wi], (i,o) row-major
    o_ref: (2, cout, tb, tm)      f32
    """
    cico = cin * cout

    def kernel(a_ref, w_ref, o_ref):
        def mac(carry, i, o):
            acc_r, acc_i = carry
            ar = a_ref[0, i, :, :]                        # (tb, tm)
            ai = a_ref[1, i, :, :]
            row = i * cout + o
            wa = w_ref[pl.ds(row, 1), :]                  # w_r           (1, tm)
            wb = w_ref[pl.ds(cico + row, 1), :]           # w_i - w_r
            wc = w_ref[pl.ds(2 * cico + row, 1), :]       # w_r + w_i
            k1 = (ar + ai) * wa
            return acc_r + (k1 - ai * wc), acc_i + (k1 + ar * wb)

        def out_channel(o):
            # Accumulator pair stays in vregs for the whole Cin loop.
            acc = (jnp.zeros((tb, tm), jnp.float32),
                   jnp.zeros((tb, tm), jnp.float32))
            if cin <= 16:
                for i in range(cin):                      # static unroll
                    acc = mac(acc, i, o)
            else:
                CH = 8
                nch = cin // CH

                def chunk(c, carry):                      # bounded unroll
                    for j in range(CH):
                        carry = mac(carry, c * CH + j, o)
                    return carry

                acc = lax.fori_loop(0, nch, chunk, acc)
                for i in range(nch * CH, cin):            # tail
                    acc = mac(acc, i, o)
            o_ref[0, o, :, :] = acc[0]
            o_ref[1, o, :, :] = acc[1]

        if cout <= 16:
            for o in range(cout):
                out_channel(o)
        else:
            def obody(o, carry):
                out_channel(o)
                return carry
            lax.fori_loop(0, cout, obody, 0)

    return kernel


def _compl_mul2d_vpu(a, w):
    """einsum('bixy,ioxy->boxy') for complex a (B,Cin,m1,m2), w (Cin,Cout,m1,m2)."""
    B, Cin, m1t, m2 = a.shape
    Cout = w.shape[1]
    M = m1t * m2

    TB, TM, Mp, vmem_limit = _choose_tiles_vpu(B, Cin, Cout, M)
    pad = Mp - M

    # Activations: (2, Cin, B, Mp) — batch on the sublane axis (dense for B>=8).
    # TODO(synk): on v6e/v7x a bf16 HBM->VMEM transfer (f32 accumulate in-kernel)
    # would halve activation traffic; kept f32 here for v5e and exactness.
    ar = jnp.real(a).reshape(B, Cin, M)
    ai = jnp.imag(a).reshape(B, Cin, M)
    a_p = jnp.stack([ar, ai]).transpose(0, 2, 1, 3).astype(jnp.float32)

    # Weights: (3*Cin*Cout, Mp), Karatsuba combinations precomputed once.
    wr = jnp.real(w).reshape(Cin * Cout, M).astype(jnp.float32)
    wi = jnp.imag(w).reshape(Cin * Cout, M).astype(jnp.float32)
    w_p = jnp.concatenate([wr, wi - wr, wr + wi], axis=0)

    if pad:
        a_p = jnp.pad(a_p, ((0, 0), (0, 0), (0, 0), (0, pad)))
        w_p = jnp.pad(w_p, ((0, 0), (0, pad)))

    # Batch is the fastest grid axis -> the weight tile (indexed by the mode tile
    # only) is reused across consecutive steps without re-DMA.
    grid = (Mp // TM, B // TB)

    out = pl.pallas_call(
        _make_vpu_kernel(Cin, Cout, TB, TM),
        out_shape=jax.ShapeDtypeStruct((2, Cout, B, Mp), jnp.float32),
        grid_spec=pltpu.PrefetchScalarGridSpec(
            num_scalar_prefetch=0,
            grid=grid,
            in_specs=[
                pl.BlockSpec((2, Cin, TB, TM), lambda mi, bi: (0, 0, bi, mi)),
                pl.BlockSpec((3 * Cin * Cout, TM), lambda mi, bi: (0, mi)),
            ],
            out_specs=pl.BlockSpec((2, Cout, TB, TM), lambda mi, bi: (0, 0, bi, mi)),
        ),
        compiler_params=pltpu.CompilerParams(
            dimension_semantics=("parallel", "parallel"),
            vmem_limit_bytes=vmem_limit),
    )(a_p, w_p)

    out_r = out[0, :, :, :M].transpose(1, 0, 2)          # (B, Cout, M)
    out_i = out[1, :, :, :M].transpose(1, 0, 2)
    return lax.complex(out_r, out_i).reshape(B, Cout, m1t, m2)


# ---------------------------------------------------------------------------
# MXU path (wide channels: min(Cin, Cout) >= 64)
# ---------------------------------------------------------------------------

def _choose_tiles_mxu(B, Cin, Cout, M):
    budget, vmem_limit = _vmem_budget()
    b_pad = _round_up(B, 8)
    ci2 = 2 * Cin
    ci2_lane = _round_up(ci2, 128)
    co2_lane = _round_up(2 * Cout, 128)
    per_mode = 4 * (b_pad * ci2_lane + _round_up(ci2, 8) * co2_lane + b_pad * co2_lane)
    tmm = max(1, budget // (2 * per_mode))               # double-buffered
    tmm = min(tmm, 256)
    if M >= 2:
        tmm = min(tmm, (M + 1) // 2)                     # >= 2 grid steps (megacore)
    tmm = max(1, tmm)
    Mpm = _round_up(M, tmm)
    return tmm, Mpm, vmem_limit


def _mxu_kernel(a_ref, w_ref, o_ref):
    # a_ref: (TMM, B, 2*Cin)   [real | imag] along the last axis
    # w_ref: (TMM, 2*Cin, 2*Cout)   per-mode [[wr, wi], [-wi, wr]]
    # o_ref: (TMM, B, 2*Cout)  [real | imag]
    # TODO(synk): on v6e/v7x (256x256 MXU) pack two mode points per matmul when
    # B < 256 to fill the systolic array.
    o_ref[...] = jnp.einsum(
        'mbi,mio->mbo', a_ref[...], w_ref[...],
        preferred_element_type=jnp.float32).astype(o_ref.dtype)


def _compl_mul2d_mxu(a, w):
    B, Cin, m1t, m2 = a.shape
    Cout = w.shape[1]
    M = m1t * m2

    TMM, Mpm, vmem_limit = _choose_tiles_mxu(B, Cin, Cout, M)

    # Activations: (M, B, 2*Cin) with [real | imag] on the lane axis.
    ar = jnp.real(a).reshape(B, Cin, M).transpose(2, 0, 1)
    ai = jnp.imag(a).reshape(B, Cin, M).transpose(2, 0, 1)
    a_p = jnp.concatenate([ar, ai], axis=2).astype(jnp.float32)

    # Weights: (M, 2*Cin, 2*Cout) real block matrix so one real matmul per mode
    # computes the full complex product.
    wr = jnp.real(w).reshape(Cin, Cout, M).transpose(2, 0, 1)
    wi = jnp.imag(w).reshape(Cin, Cout, M).transpose(2, 0, 1)
    top = jnp.concatenate([wr, wi], axis=2)
    bot = jnp.concatenate([-wi, wr], axis=2)
    w_p = jnp.concatenate([top, bot], axis=1).astype(jnp.float32)

    pad = Mpm - M
    if pad:
        a_p = jnp.pad(a_p, ((0, pad), (0, 0), (0, 0)))
        w_p = jnp.pad(w_p, ((0, pad), (0, 0), (0, 0)))

    out = pl.pallas_call(
        _mxu_kernel,
        out_shape=jax.ShapeDtypeStruct((Mpm, B, 2 * Cout), jnp.float32),
        grid_spec=pltpu.PrefetchScalarGridSpec(
            num_scalar_prefetch=0,
            grid=(Mpm // TMM,),
            in_specs=[
                pl.BlockSpec((TMM, B, 2 * Cin), lambda mi: (mi, 0, 0)),
                pl.BlockSpec((TMM, 2 * Cin, 2 * Cout), lambda mi: (mi, 0, 0)),
            ],
            out_specs=pl.BlockSpec((TMM, B, 2 * Cout), lambda mi: (mi, 0, 0)),
        ),
        compiler_params=pltpu.CompilerParams(
            dimension_semantics=("parallel",),
            vmem_limit_bytes=vmem_limit),
    )(a_p, w_p)

    out_r = out[:M, :, :Cout].transpose(1, 2, 0)         # (B, Cout, M)
    out_i = out[:M, :, Cout:].transpose(1, 2, 0)
    return lax.complex(out_r, out_i).reshape(B, Cout, m1t, m2)


# ---------------------------------------------------------------------------
# Public entry points
# ---------------------------------------------------------------------------

def compl_mul2d_pallas(a, w):
    """Complex einsum('bixy,ioxy->boxy') via Pallas (MXU for wide channels)."""
    Cin, Cout = w.shape[0], w.shape[1]
    if min(Cin, Cout) >= 64:
        return _compl_mul2d_mxu(a, w)
    return _compl_mul2d_vpu(a, w)


def spectral_conv2d(x, weights1, weights2, modes1, modes2):
    """Forward pass matching the PyTorch SpectralConv2d module.

    x: (B, Cin, H, W) float32
    weights1/weights2: (Cin, Cout, modes1, modes2) complex64
    returns: (B, Cout, H, W) float32
    """
    B, Cin, H, W = x.shape
    Cout = weights1.shape[1]
    assert modes1 <= H // 2, "top/bottom mode blocks would overlap"
    assert modes2 <= W // 2 + 1, "modes2 exceeds the rfft width"

    # TODO(synk): rfftn/irfftn have no Pallas TPU primitive; they remain XLA ops.
    x_ft = jnp.fft.rfftn(x, axes=(2, 3))                  # (B, Cin, H, W//2+1)

    # Fuse both weight contractions into a single Pallas call: concatenate the
    # top-mode and bottom-mode slices (and the two weight tensors) along modes1.
    a_c = jnp.concatenate([x_ft[:, :, :modes1, :modes2],
                           x_ft[:, :, -modes1:, :modes2]], axis=2)   # (B,Cin,2*m1,m2)
    w_c = jnp.concatenate([weights1, weights2], axis=2)              # (Cin,Cout,2*m1,m2)

    out_c = compl_mul2d_pallas(a_c, w_c)                  # (B, Cout, 2*m1, m2)

    # TODO(synk): out_ft assembly is a separate XLA scatter pass; a fused
    # writeback (input_output_aliases into a preallocated spectrum) would save
    # one HBM pass in the mem-bound small-channel regime.
    out_ft = jnp.zeros((B, Cout, H, W // 2 + 1), dtype=jnp.complex64)
    out_ft = out_ft.at[:, :, :modes1, :modes2].set(out_c[:, :, :modes1, :])
    out_ft = out_ft.at[:, :, -modes1:, :modes2].set(out_c[:, :, modes1:, :])

    y = jnp.fft.irfftn(out_ft, s=(H, W), axes=(2, 3))
    return y.astype(jnp.float32)


# ---------------------------------------------------------------------------
# Self-test
# ---------------------------------------------------------------------------

def _reference(x, w1, w2, modes1, modes2):
    B, _, H, W = x.shape
    Cout = w1.shape[1]
    x_ft = jnp.fft.rfftn(x, axes=(2, 3))
    out_ft = jnp.zeros((B, Cout, H, W // 2 + 1), dtype=jnp.complex64)
    out_ft = out_ft.at[:, :, :modes1, :modes2].set(
        jnp.einsum('bixy,ioxy->boxy', x_ft[:, :, :modes1, :modes2], w1))
    out_ft = out_ft.at[:, :, -modes1:, :modes2].set(
        jnp.einsum('bixy,ioxy->boxy', x_ft[:, :, -modes1:, :modes2], w2))
    return jnp.fft.irfftn(out_ft, s=(H, W), axes=(2, 3)).astype(jnp.float32)


if __name__ == "__main__":
    fwd = jax.jit(spectral_conv2d, static_argnums=(3, 4))

    def run_case(B, Cin, Cout, H, W, modes1, modes2, seed):
        key = jax.random.PRNGKey(seed)
        kx, k1r, k1i, k2r, k2i = jax.random.split(key, 5)
        x = jax.random.normal(kx, (B, Cin, H, W), dtype=jnp.float32)
        # torch.rand(..., dtype=cfloat): real & imag each Uniform[0,1), scaled.
        scale = 1.0 / (Cin * Cout)
        shp = (Cin, Cout, modes1, modes2)
        w1 = lax.complex(scale * jax.random.uniform(k1r, shp, dtype=jnp.float32),
                         scale * jax.random.uniform(k1i, shp, dtype=jnp.float32))
        w2 = lax.complex(scale * jax.random.uniform(k2r, shp, dtype=jnp.float32),
                         scale * jax.random.uniform(k2i, shp, dtype=jnp.float32))

        y = jax.block_until_ready(fwd(x, w1, w2, modes1, modes2))
        y_ref = jax.block_until_ready(_reference(x, w1, w2, modes1, modes2))

        assert y.shape == (B, Cout, H, W)
        err = float(jnp.max(jnp.abs(y - y_ref)))
        tol = 5e-2 * float(jnp.max(jnp.abs(y_ref))) + 1e-5
        assert err <= tol, f"mismatch: err={err} tol={tol}"

    # Small-channel configuration -> VPU broadcast-loop kernel.
    run_case(B=2, Cin=4, Cout=4, H=16, W=16, modes1=6, modes2=6, seed=0)
    # Wide-channel configuration -> per-mode batched real matmuls on the MXU.
    run_case(B=8, Cin=64, Cout=64, H=32, W=32, modes1=8, modes2=8, seed=1)

    print("KERNEL_OK")
</pallas_src>

<mosaic_0001>
module attributes {stable_mosaic.version = 11 : i64} {
  func.func @kernel(%arg0: i32, %arg1: i32, %arg2: memref<2x4x2x128xf32, #tpu.memory_space<vmem>>, %arg3: memref<48x128xf32, #tpu.memory_space<vmem>>, %arg4: memref<2x4x2x128xf32, #tpu.memory_space<vmem>>) attributes {dimension_semantics = [#tpu.dimension_semantics<parallel>, #tpu.dimension_semantics<parallel>], iteration_bounds = array<i64: 1, 1>, scalar_prefetch = 0 : i64, scratch_operands = 0 : i64, tpu.core_type = #tpu.core_type<tc>, window_params = [{transform_indices = @transform_0, window_bounds = array<i64: 2, 4, 2, 128>}, {transform_indices = @transform_1, window_bounds = array<i64: 48, 128>}, {transform_indices = @transform_2, window_bounds = array<i64: 2, 4, 2, 128>}]} {
    %cst = arith.constant 0.000000e+00 : f32
    %0 = vector.broadcast %cst : f32 to vector<2x128xf32>
    %cst_0 = arith.constant 0.000000e+00 : f32
    %1 = vector.broadcast %cst_0 : f32 to vector<2x128xf32>
    %c0 = arith.constant 0 : index
    %c0_1 = arith.constant 0 : index
    %c0_2 = arith.constant 0 : index
    %c0_3 = arith.constant 0 : index
    %2 = vector.load %arg2[%c0, %c0_1, %c0_2, %c0_3] : memref<2x4x2x128xf32, #tpu.memory_space<vmem>>, vector<1x1x2x128xf32>
    %3 = vector.shape_cast %2 : vector<1x1x2x128xf32> to vector<2x128xf32>
    %c1 = arith.constant 1 : index
    %c0_4 = arith.constant 0 : index
    %c0_5 = arith.constant 0 : index
    %c0_6 = arith.constant 0 : index
    %4 = vector.load %arg2[%c1, %c0_4, %c0_5, %c0_6] : memref<2x4x2x128xf32, #tpu.memory_space<vmem>>, vector<1x1x2x128xf32>
    %5 = vector.shape_cast %4 : vector<1x1x2x128xf32> to vector<2x128xf32>
    %c0_7 = arith.constant 0 : index
    %c0_8 = arith.constant 0 : index
    %6 = vector.load %arg3[%c0_7, %c0_8] : memref<48x128xf32, #tpu.memory_space<vmem>>, vector<1x128xf32>
    %c16 = arith.constant 16 : index
    %c0_9 = arith.constant 0 : index
    %7 = vector.load %arg3[%c16, %c0_9] : memref<48x128xf32, #tpu.memory_space<vmem>>, vector<1x128xf32>
    %c32 = arith.constant 32 : index
    %c0_10 = arith.constant 0 : index
    %8 = vector.load %arg3[%c32, %c0_10] : memref<48x128xf32, #tpu.memory_space<vmem>>, vector<1x128xf32>
    %9 = arith.addf %3, %5 : vector<2x128xf32>
    %10 = vector.broadcast %6 : vector<1x128xf32> to vector<2x128xf32>
    %11 = arith.mulf %9, %10 : vector<2x128xf32>
    %12 = vector.broadcast %8 : vector<1x128xf32> to vector<2x128xf32>
    %13 = arith.mulf %5, %12 : vector<2x128xf32>
    %14 = arith.subf %11, %13 : vector<2x128xf32>
    %15 = arith.addf %0, %14 : vector<2x128xf32>
    %16 = vector.broadcast %7 : vector<1x128xf32> to vector<2x128xf32>
    %17 = arith.mulf %3, %16 : vector<2x128xf32>
    %18 = arith.addf %11, %17 : vector<2x128xf32>
    %19 = arith.addf %1, %18 : vector<2x128xf32>
    %c0_11 = arith.constant 0 : index
    %c1_12 = arith.constant 1 : index
    %c0_13 = arith.constant 0 : index
    %c0_14 = arith.constant 0 : index
    %20 = vector.load %arg2[%c0_11, %c1_12, %c0_13, %c0_14] : memref<2x4x2x128xf32, #tpu.memory_space<vmem>>, vector<1x1x2x128xf32>
    %21 = vector.shape_cast %20 : vector<1x1x2x128xf32> to vector<2x128xf32>
    %c1_15 = arith.constant 1 : index
    %c1_16 = arith.constant 1 : index
    %c0_17 = arith.constant 0 : index
    %c0_18 = arith.constant 0 : index
    %22 = vector.load %arg2[%c1_15, %c1_16, %c0_17, %c0_18] : memref<2x4x2x128xf32, #tpu.memory_space<vmem>>, vector<1x1x2x128xf32>
    %23 = vector.shape_cast %22 : vector<1x1x2x128xf32> to vector<2x128xf32>
    %c4 = arith.constant 4 : index
    %c0_19 = arith.constant 0 : index
    %24 = vector.load %arg3[%c4, %c0_19] : memref<48x128xf32, #tpu.memory_space<vmem>>, vector<1x128xf32>
    %c20 = arith.constant 20 : index
    %c0_20 = arith.constant 0 : index
    %25 = vector.load %arg3[%c20, %c0_20] : memref<48x128xf32, #tpu.memory_space<vmem>>, vector<1x128xf32>
    %c36 = arith.constant 36 : index
    %c0_21 = arith.constant 0 : index
    %26 = vector.load %arg3[%c36, %c0_21] : memref<48x128xf32, #tpu.memory_space<vmem>>, vector<1x128xf32>
    %27 = arith.addf %21, %23 : vector<2x128xf32>
    %28 = vector.broadcast %24 : vector<1x128xf32> to vector<2x128xf32>
    %29 = arith.mulf %27, %28 : vector<2x128xf32>
    %30 = vector.broadcast %26 : vector<1x128xf32> to vector<2x128xf32>
    %31 = arith.mulf %23, %30 : vector<2x128xf32>
    %32 = arith.subf %29, %31 : vector<2x128xf32>
    %33 = arith.addf %15, %32 : vector<2x128xf32>
    %34 = vector.broadcast %25 : vector<1x128xf32> to vector<2x128xf32>
    %35 = arith.mulf %21, %34 : vector<2x128xf32>
    %36 = arith.addf %29, %35 : vector<2x128xf32>
    %37 = arith.addf %19, %36 : vector<2x128xf32>
    %c0_22 = arith.constant 0 : index
    %c2 = arith.constant 2 : index
    %c0_23 = arith.constant 0 : index
    %c0_24 = arith.constant 0 : index
    %38 = vector.load %arg2[%c0_22, %c2, %c0_23, %c0_24] : memref<2x4x2x128xf32, #tpu.memory_space<vmem>>, vector<1x1x2x128xf32>
    %39 = vector.shape_cast %38 : vector<1x1x2x128xf32> to vector<2x128xf32>
    %c1_25 = arith.constant 1 : index
    %c2_26 = arith.constant 2 : index
    %c0_27 = arith.constant 0 : index
    %c0_28 = arith.constant 0 : index
    %40 = vector.load %arg2[%c1_25, %c2_26, %c0_27, %c0_28] : memref<2x4x2x128xf32, #tpu.memory_space<vmem>>, vector<1x1x2x128xf32>
    %41 = vector.shape_cast %40 : vector<1x1x2x128xf32> to vector<2x128xf32>
    %c8 = arith.constant 8 : index
    %c0_29 = arith.constant 0 : index
    %42 = vector.load %arg3[%c8, %c0_29] : memref<48x128xf32, #tpu.memory_space<vmem>>, vector<1x128xf32>
    %c24 = arith.constant 24 : index
    %c0_30 = arith.constant 0 : index
    %43 = vector.load %arg3[%c24, %c0_30] : memref<48x128xf32, #tpu.memory_space<vmem>>, vector<1x128xf32>
    %c40 = arith.constant 40 : index
    %c0_31 = arith.constant 0 : index
    %44 = vector.load %arg3[%c40, %c0_31] : memref<48x128xf32, #tpu.memory_space<vmem>>, vector<1x128xf32>
    %45 = arith.addf %39, %41 : vector<2x128xf32>
    %46 = vector.broadcast %42 : vector<1x128xf32> to vector<2x128xf32>
    %47 = arith.mulf %45, %46 : vector<2x128xf32>
    %48 = vector.broadcast %44 : vector<1x128xf32> to vector<2x128xf32>
    %49 = arith.mulf %41, %48 : vector<2x128xf32>
    %50 = arith.subf %47, %49 : vector<2x128xf32>
    %51 = arith.addf %33, %50 : vector<2x128xf32>
    %52 = vector.broadcast %43 : vector<1x128xf32> to vector<2x128xf32>
    %53 = arith.mulf %39, %52 : vector<2x128xf32>
    %54 = arith.addf %47, %53 : vector<2x128xf32>
    %55 = arith.addf %37, %54 : vector<2x128xf32>
    %c0_32 = arith.constant 0 : index
    %c3 = arith.constant 3 : index
    %c0_33 = arith.constant 0 : index
    %c0_34 = arith.constant 0 : index
    %56 = vector.load %arg2[%c0_32, %c3, %c0_33, %c0_34] : memref<2x4x2x128xf32, #tpu.memory_space<vmem>>, vector<1x1x2x128xf32>
    %57 = vector.shape_cast %56 : vector<1x1x2x128xf32> to vector<2x128xf32>
    %c1_35 = arith.constant 1 : index
    %c3_36 = arith.constant 3 : index
    %c0_37 = arith.constant 0 : index
    %c0_38 = arith.constant 0 : index
    %58 = vector.load %arg2[%c1_35, %c3_36, %c0_37, %c0_38] : memref<2x4x2x128xf32, #tpu.memory_space<vmem>>, vector<1x1x2x128xf32>
    %59 = vector.shape_cast %58 : vector<1x1x2x128xf32> to vector<2x128xf32>
    %c12 = arith.constant 12 : index
    %c0_39 = arith.constant 0 : index
    %60 = vector.load %arg3[%c12, %c0_39] : memref<48x128xf32, #tpu.memory_space<vmem>>, vector<1x128xf32>
    %c28 = arith.constant 28 : index
    %c0_40 = arith.constant 0 : index
    %61 = vector.load %arg3[%c28, %c0_40] : memref<48x128xf32, #tpu.memory_space<vmem>>, vector<1x128xf32>
    %c44 = arith.constant 44 : index
    %c0_41 = arith.constant 0 : index
    %62 = vector.load %arg3[%c44, %c0_41] : memref<48x128xf32, #tpu.memory_space<vmem>>, vector<1x128xf32>
    %63 = arith.addf %57, %59 : vector<2x128xf32>
    %64 = vector.broadcast %60 : vector<1x128xf32> to vector<2x128xf32>
    %65 = arith.mulf %63, %64 : vector<2x128xf32>
    %66 = vector.broadcast %62 : vector<1x128xf32> to vector<2x128xf32>
    %67 = arith.mulf %59, %66 : vector<2x128xf32>
    %68 = arith.subf %65, %67 : vector<2x128xf32>
    %69 = arith.addf %51, %68 : vector<2x128xf32>
    %70 = vector.broadcast %61 : vector<1x128xf32> to vector<2x128xf32>
    %71 = arith.mulf %57, %70 : vector<2x128xf32>
    %72 = arith.addf %65, %71 : vector<2x128xf32>
    %73 = arith.addf %55, %72 : vector<2x128xf32>
    %c0_42 = arith.constant 0 : index
    %c0_43 = arith.constant 0 : index
    %c0_44 = arith.constant 0 : index
    %c0_45 = arith.constant 0 : index
    %74 = vector.load %arg4[%c0_42, %c0_43, %c0_44, %c0_45] : memref<2x4x2x128xf32, #tpu.memory_space<vmem>>, vector<1x1x2x128xf32>
    %75 = vector.shape_cast %74 : vector<1x1x2x128xf32> to vector<2x128xf32>
    %76 = vector.shape_cast %69 : vector<2x128xf32> to vector<1x1x2x128xf32>
    tpu.vector_store %arg4[%c0_42, %c0_43, %c0_44, %c0_45], %76 {strides = array<i32>} : memref<2x4x2x128xf32, #tpu.memory_space<vmem>>, vector<1x1x2x128xf32>,
    %c1_46 = arith.constant 1 : index
    %c0_47 = arith.constant 0 : index
    %c0_48 = arith.constant 0 : index
    %c0_49 = arith.constant 0 : index
    %77 = vector.load %arg4[%c1_46, %c0_47, %c0_48, %c0_49] : memref<2x4x2x128xf32, #tpu.memory_space<vmem>>, vector<1x1x2x128xf32>
    %78 = vector.shape_cast %77 : vector<1x1x2x128xf32> to vector<2x128xf32>
    %79 = vector.shape_cast %73 : vector<2x128xf32> to vector<1x1x2x128xf32>
    tpu.vector_store %arg4[%c1_46, %c0_47, %c0_48, %c0_49], %79 {strides = array<i32>} : memref<2x4x2x128xf32, #tpu.memory_space<vmem>>, vector<1x1x2x128xf32>,
    %cst_50 = arith.constant 0.000000e+00 : f32
    %80 = vector.broadcast %cst_50 : f32 to vector<2x128xf32>
    %cst_51 = arith.constant 0.000000e+00 : f32
    %81 = vector.broadcast %cst_51 : f32 to vector<2x128xf32>
    %c0_52 = arith.constant 0 : index
    %c0_53 = arith.constant 0 : index
    %c0_54 = arith.constant 0 : index
    %c0_55 = arith.constant 0 : index
    %82 = vector.load %arg2[%c0_52, %c0_53, %c0_54, %c0_55] : memref<2x4x2x128xf32, #tpu.memory_space<vmem>>, vector<1x1x2x128xf32>
    %83 = vector.shape_cast %82 : vector<1x1x2x128xf32> to vector<2x128xf32>
    %c1_56 = arith.constant 1 : index
    %c0_57 = arith.constant 0 : index
    %c0_58 = arith.constant 0 : index
    %c0_59 = arith.constant 0 : index
    %84 = vector.load %arg2[%c1_56, %c0_57, %c0_58, %c0_59] : memref<2x4x2x128xf32, #tpu.memory_space<vmem>>, vector<1x1x2x128xf32>
    %85 = vector.shape_cast %84 : vector<1x1x2x128xf32> to vector<2x128xf32>
    %c1_60 = arith.constant 1 : index
    %c0_61 = arith.constant 0 : index
    %86 = vector.load %arg3[%c1_60, %c0_61] : memref<48x128xf32, #tpu.memory_space<vmem>>, vector<1x128xf32>
    %c17 = arith.constant 17 : index
    %c0_62 = arith.constant 0 : index
    %87 = vector.load %arg3[%c17, %c0_62] : memref<48x128xf32, #tpu.memory_space<vmem>>, vector<1x128xf32>
    %c33 = arith.constant 33 : index
    %c0_63 = arith.constant 0 : index
    %88 = vector.load %arg3[%c33, %c0_63] : memref<48x128xf32, #tpu.memory_space<vmem>>, vector<1x128xf32>
    %89 = arith.addf %83, %85 : vector<2x128xf32>
    %90 = vector.broadcast %86 : vector<1x128xf32> to vector<2x128xf32>
    %91 = arith.mulf %89, %90 : vector<2x128xf32>
    %92 = vector.broadcast %88 : vector<1x128xf32> to vector<2x128xf32>
    %93 = arith.mulf %85, %92 : vector<2x128xf32>
    %94 = arith.subf %91, %93 : vector<2x128xf32>
    %95 = arith.addf %80, %94 : vector<2x128xf32>
    %96 = vector.broadcast %87 : vector<1x128xf32> to vector<2x128xf32>
    %97 = arith.mulf %83, %96 : vector<2x128xf32>
    %98 = arith.addf %91, %97 : vector<2x128xf32>
    %99 = arith.addf %81, %98 : vector<2x128xf32>
    %c0_64 = arith.constant 0 : index
    %c1_65 = arith.constant 1 : index
    %c0_66 = arith.constant 0 : index
    %c0_67 = arith.constant 0 : index
    %100 = vector.load %arg2[%c0_64, %c1_65, %c0_66, %c0_67] : memref<2x4x2x128xf32, #tpu.memory_space<vmem>>, vector<1x1x2x128xf32>
    %101 = vector.shape_cast %100 : vector<1x1x2x128xf32> to vector<2x128xf32>
    %c1_68 = arith.constant 1 : index
    %c1_69 = arith.constant 1 : index
    %c0_70 = arith.constant 0 : index
    %c0_71 = arith.constant 0 : index
    %102 = vector.load %arg2[%c1_68, %c1_69, %c0_70, %c0_71] : memref<2x4x2x128xf32, #tpu.memory_space<vmem>>, vector<1x1x2x128xf32>
    %103 = vector.shape_cast %102 : vector<1x1x2x128xf32> to vector<2x128xf32>
    %c5 = arith.constant 5 : index
    %c0_72 = arith.constant 0 : index
    %104 = vector.load %arg3[%c5, %c0_72] : memref<48x128xf32, #tpu.memory_space<vmem>>, vector<1x128xf32>
    %c21 = arith.constant 21 : index
    %c0_73 = arith.constant 0 : index
    %105 = vector.load %arg3[%c21, %c0_73] : memref<48x128xf32, #tpu.memory_space<vmem>>, vector<1x128xf32>
    %c37 = arith.constant 37 : index
    %c0_74 = arith.constant 0 : index
    %106 = vector.load %arg3[%c37, %c0_74] : memref<48x128xf32, #tpu.memory_space<vmem>>, vector<1x128xf32>
    %107 = arith.addf %101, %103 : vector<2x128xf32>
    %108 = vector.broadcast %104 : vector<1x128xf32> to vector<2x128xf32>
    %109 = arith.mulf %107, %108 : vector<2x128xf32>
    %110 = vector.broadcast %106 : vector<1x128xf32> to vector<2x128xf32>
    %111 = arith.mulf %103, %110 : vector<2x128xf32>
    %112 = arith.subf %109, %111 : vector<2x128xf32>
    %113 = arith.addf %95, %112 : vector<2x128xf32>
    %114 = vector.broadcast %105 : vector<1x128xf32> to vector<2x128xf32>
    %115 = arith.mulf %101, %114 : vector<2x128xf32>
    %116 = arith.addf %109, %115 : vector<2x128xf32>
    %117 = arith.addf %99, %116 : vector<2x128xf32>
    %c0_75 = arith.constant 0 : index
    %c2_76 = arith.constant 2 : index
    %c0_77 = arith.constant 0 : index
    %c0_78 = arith.constant 0 : index
    %118 = vector.load %arg2[%c0_75, %c2_76, %c0_77, %c0_78] : memref<2x4x2x128xf32, #tpu.memory_space<vmem>>, vector<1x1x2x128xf32>
    %119 = vector.shape_cast %118 : vector<1x1x2x128xf32> to vector<2x128xf32>
    %c1_79 = arith.constant 1 : index
    %c2_80 = arith.constant 2 : index
    %c0_81 = arith.constant 0 : index
    %c0_82 = arith.constant 0 : index
    %120 = vector.load %arg2[%c1_79, %c2_80, %c0_81, %c0_82] : memref<2x4x2x128xf32, #tpu.memory_space<vmem>>, vector<1x1x2x128xf32>
    %121 = vector.shape_cast %120 : vector<1x1x2x128xf32> to vector<2x128xf32>
    %c9 = arith.constant 9 : index
    %c0_83 = arith.constant 0 : index
    %122 = vector.load %arg3[%c9, %c0_83] : memref<48x128xf32, #tpu.memory_space<vmem>>, vector<1x128xf32>
    %c25 = arith.constant 25 : index
    %c0_84 = arith.constant 0 : index
    %123 = vector.load %arg3[%c25, %c0_84] : memref<48x128xf32, #tpu.memory_space<vmem>>, vector<1x128xf32>
    %c41 = arith.constant 41 : index
    %c0_85 = arith.constant 0 : index
    %124 = vector.load %arg3[%c41, %c0_85] : memref<48x128xf32, #tpu.memory_space<vmem>>, vector<1x128xf32>
    %125 = arith.addf %119, %121 : vector<2x128xf32>
    %126 = vector.broadcast %122 : vector<1x128xf32> to vector<2x128xf32>
    %127 = arith.mulf %125, %126 : vector<2x128xf32>
    %128 = vector.broadcast %124 : vector<1x128xf32> to vector<2x128xf32>
    %129 = arith.mulf %121, %128 : vector<2x128xf32>
    %130 = arith.subf %127, %129 : vector<2x128xf32>
    %131 = arith.addf %113, %130 : vector<2x128xf32>
    %132 = vector.broadcast %123 : vector<1x128xf32> to vector<2x128xf32>
    %133 = arith.mulf %119, %132 : vector<2x128xf32>
    %134 = arith.addf %127, %133 : vector<2x128xf32>
    %135 = arith.addf %117, %134 : vector<2x128xf32>
    %c0_86 = arith.constant 0 : index
    %c3_87 = arith.constant 3 : index
    %c0_88 = arith.constant 0 : index
    %c0_89 = arith.constant 0 : index
    %136 = vector.load %arg2[%c0_86, %c3_87, %c0_88, %c0_89] : memref<2x4x2x128xf32, #tpu.memory_space<vmem>>, vector<1x1x2x128xf32>
    %137 = vector.shape_cast %136 : vector<1x1x2x128xf32> to vector<2x128xf32>
    %c1_90 = arith.constant 1 : index
    %c3_91 = arith.constant 3 : index
    %c0_92 = arith.constant 0 : index
    %c0_93 = arith.constant 0 : index
    %138 = vector.load %arg2[%c1_90, %c3_91, %c0_92, %c0_93] : memref<2x4x2x128xf32, #tpu.memory_space<vmem>>, vector<1x1x2x128xf32>
    %139 = vector.shape_cast %138 : vector<1x1x2x128xf32> to vector<2x128xf32>
    %c13 = arith.constant 13 : index
    %c0_94 = arith.constant 0 : index
    %140 = vector.load %arg3[%c13, %c0_94] : memref<48x128xf32, #tpu.memory_space<vmem>>, vector<1x128xf32>
    %c29 = arith.constant 29 : index
    %c0_95 = arith.constant 0 : index
    %141 = vector.load %arg3[%c29, %c0_95] : memref<48x128xf32, #tpu.memory_space<vmem>>, vector<1x128xf32>
    %c45 = arith.constant 45 : index
    %c0_96 = arith.constant 0 : index
    %142 = vector.load %arg3[%c45, %c0_96] : memref<48x128xf32, #tpu.memory_space<vmem>>, vector<1x128xf32>
    %143 = arith.addf %137, %139 : vector<2x128xf32>
    %144 = vector.broadcast %140 : vector<1x128xf32> to vector<2x128xf32>
    %145 = arith.mulf %143, %144 : vector<2x128xf32>
    %146 = vector.broadcast %142 : vector<1x128xf32> to vector<2x128xf32>
    %147 = arith.mulf %139, %146 : vector<2x128xf32>
    %148 = arith.subf %145, %147 : vector<2x128xf32>
    %149 = arith.addf %131, %148 : vector<2x128xf32>
    %150 = vector.broadcast %141 : vector<1x128xf32> to vector<2x128xf32>
    %151 = arith.mulf %137, %150 : vector<2x128xf32>
    %152 = arith.addf %145, %151 : vector<2x128xf32>
    %153 = arith.addf %135, %152 : vector<2x128xf32>
    %c0_97 = arith.constant 0 : index
    %c1_98 = arith.constant 1 : index
    %c0_99 = arith.constant 0 : index
    %c0_100 = arith.constant 0 : index
    %154 = vector.load %arg4[%c0_97, %c1_98, %c0_99, %c0_100] : memref<2x4x2x128xf32, #tpu.memory_space<vmem>>, vector<1x1x2x128xf32>
    %155 = vector.shape_cast %154 : vector<1x1x2x128xf32> to vector<2x128xf32>
    %156 = vector.shape_cast %149 : vector<2x128xf32> to vector<1x1x2x128xf32>
    tpu.vector_store %arg4[%c0_97, %c1_98, %c0_99, %c0_100], %156 {strides = array<i32>} : memref<2x4x2x128xf32, #tpu.memory_space<vmem>>, vector<1x1x2x128xf32>,
    %c1_101 = arith.constant 1 : index
    %c1_102 = arith.constant 1 : index
    %c0_103 = arith.constant 0 : index
    %c0_104 = arith.constant 0 : index
    %157 = vector.load %arg4[%c1_101, %c1_102, %c0_103, %c0_104] : memref<2x4x2x128xf32, #tpu.memory_space<vmem>>, vector<1x1x2x128xf32>
    %158 = vector.shape_cast %157 : vector<1x1x2x128xf32> to vector<2x128xf32>
    %159 = vector.shape_cast %153 : vector<2x128xf32> to vector<1x1x2x128xf32>
    tpu.vector_store %arg4[%c1_101, %c1_102, %c0_103, %c0_104], %159 {strides = array<i32>} : memref<2x4x2x128xf32, #tpu.memory_space<vmem>>, vector<1x1x2x128xf32>,
    %cst_105 = arith.constant 0.000000e+00 : f32
    %160 = vector.broadcast %cst_105 : f32 to vector<2x128xf32>
    %cst_106 = arith.constant 0.000000e+00 : f32
    %161 = vector.broadcast %cst_106 : f32 to vector<2x128xf32>
    %c0_107 = arith.constant 0 : index
    %c0_108 = arith.constant 0 : index
    %c0_109 = arith.constant 0 : index
    %c0_110 = arith.constant 0 : index
    %162 = vector.load %arg2[%c0_107, %c0_108, %c0_109, %c0_110] : memref<2x4x2x128xf32, #tpu.memory_space<vmem>>, vector<1x1x2x128xf32>
    %163 = vector.shape_cast %162 : vector<1x1x2x128xf32> to vector<2x128xf32>
    %c1_111 = arith.constant 1 : index
    %c0_112 = arith.constant 0 : index
    %c0_113 = arith.constant 0 : index
    %c0_114 = arith.constant 0 : index
    %164 = vector.load %arg2[%c1_111, %c0_112, %c0_113, %c0_114] : memref<2x4x2x128xf32, #tpu.memory_space<vmem>>, vector<1x1x2x128xf32>
    %165 = vector.shape_cast %164 : vector<1x1x2x128xf32> to vector<2x128xf32>
    %c2_115 = arith.constant 2 : index
    %c0_116 = arith.constant 0 : index
    %166 = vector.load %arg3[%c2_115, %c0_116] : memref<48x128xf32, #tpu.memory_space<vmem>>, vector<1x128xf32>
    %c18 = arith.constant 18 : index
    %c0_117 = arith.constant 0 : index
    %167 = vector.load %arg3[%c18, %c0_117] : memref<48x128xf32, #tpu.memory_space<vmem>>, vector<1x128xf32>
    %c34 = arith.constant 34 : index
    %c0_118 = arith.constant 0 : index
    %168 = vector.load %arg3[%c34, %c0_118] : memref<48x128xf32, #tpu.memory_space<vmem>>, vector<1x128xf32>
    %169 = arith.addf %163, %165 : vector<2x128xf32>
    %170 = vector.broadcast %166 : vector<1x128xf32> to vector<2x128xf32>
    %171 = arith.mulf %169, %170 : vector<2x128xf32>
    %172 = vector.broadcast %168 : vector<1x128xf32> to vector<2x128xf32>
    %173 = arith.mulf %165, %172 : vector<2x128xf32>
    %174 = arith.subf %171, %173 : vector<2x128xf32>
    %175 = arith.addf %160, %174 : vector<2x128xf32>
    %176 = vector.broadcast %167 : vector<1x128xf32> to vector<2x128xf32>
    %177 = arith.mulf %163, %176 : vector<2x128xf32>
    %178 = arith.addf %171, %177 : vector<2x128xf32>
    %179 = arith.addf %161, %178 : vector<2x128xf32>
    %c0_119 = arith.constant 0 : index
    %c1_120 = arith.constant 1 : index
    %c0_121 = arith.constant 0 : index
    %c0_122 = arith.constant 0 : index
    %180 = vector.load %arg2[%c0_119, %c1_120, %c0_121, %c0_122] : memref<2x4x2x128xf32, #tpu.memory_space<vmem>>, vector<1x1x2x128xf32>
    %181 = vector.shape_cast %180 : vector<1x1x2x128xf32> to vector<2x128xf32>
    %c1_123 = arith.constant 1 : index
    %c1_124 = arith.constant 1 : index
    %c0_125 = arith.constant 0 : index
    %c0_126 = arith.constant 0 : index
    %182 = vector.load %arg2[%c1_123, %c1_124, %c0_125, %c0_126] : memref<2x4x2x128xf32, #tpu.memory_space<vmem>>, vector<1x1x2x128xf32>
    %183 = vector.shape_cast %182 : vector<1x1x2x128xf32> to vector<2x128xf32>
    %c6 = arith.constant 6 : index
    %c0_127 = arith.constant 0 : index
    %184 = vector.load %arg3[%c6, %c0_127] : memref<48x128xf32, #tpu.memory_space<vmem>>, vector<1x128xf32>
    %c22 = arith.constant 22 : index
    %c0_128 = arith.constant 0 : index
    %185 = vector.load %arg3[%c22, %c0_128] : memref<48x128xf32, #tpu.memory_space<vmem>>, vector<1x128xf32>
    %c38 = arith.constant 38 : index
    %c0_129 = arith.constant 0 : index
    %186 = vector.load %arg3[%c38, %c0_129] : memref<48x128xf32, #tpu.memory_space<vmem>>, vector<1x128xf32>
    %187 = arith.addf %181, %183 : vector<2x128xf32>
    %188 = vector.broadcast %184 : vector<1x128xf32> to vector<2x128xf32>
    %189 = arith.mulf %187, %188 : vector<2x128xf32>
    %190 = vector.broadcast %186 : vector<1x128xf32> to vector<2x128xf32>
    %191 = arith.mulf %183, %190 : vector<2x128xf32>
    %192 = arith.subf %189, %191 : vector<2x128xf32>
    %193 = arith.addf %175, %192 : vector<2x128xf32>
    %194 = vector.broadcast %185 : vector<1x128xf32> to vector<2x128xf32>
    %195 = arith.mulf %181, %194 : vector<2x128xf32>
    %196 = arith.addf %189, %195 : vector<2x128xf32>
    %197 = arith.addf %179, %196 : vector<2x128xf32>
    %c0_130 = arith.constant 0 : index
    %c2_131 = arith.constant 2 : index
    %c0_132 = arith.constant 0 : index
    %c0_133 = arith.constant 0 : index
    %198 = vector.load %arg2[%c0_130, %c2_131, %c0_132, %c0_133] : memref<2x4x2x128xf32, #tpu.memory_space<vmem>>, vector<1x1x2x128xf32>
    %199 = vector.shape_cast %198 : vector<1x1x2x128xf32> to vector<2x128xf32>
    %c1_134 = arith.constant 1 : index
    %c2_135 = arith.constant 2 : index
    %c0_136 = arith.constant 0 : index
    %c0_137 = arith.constant 0 : index
    %200 = vector.load %arg2[%c1_134, %c2_135, %c0_136, %c0_137] : memref<2x4x2x128xf32, #tpu.memory_space<vmem>>, vector<1x1x2x128xf32>
    %201 = vector.shape_cast %200 : vector<1x1x2x128xf32> to vector<2x128xf32>
    %c10 = arith.constant 10 : index
    %c0_138 = arith.constant 0 : index
    %202 = vector.load %arg3[%c10, %c0_138] : memref<48x128xf32, #tpu.memory_space<vmem>>, vector<1x128xf32>
    %c26 = arith.constant 26 : index
    %c0_139 = arith.constant 0 : index
    %203 = vector.load %arg3[%c26, %c0_139] : memref<48x128xf32, #tpu.memory_space<vmem>>, vector<1x128xf32>
    %c42 = arith.constant 42 : index
    %c0_140 = arith.constant 0 : index
    %204 = vector.load %arg3[%c42, %c0_140] : memref<48x128xf32, #tpu.memory_space<vmem>>, vector<1x128xf32>
    %205 = arith.addf %199, %201 : vector<2x128xf32>
    %206 = vector.broadcast %202 : vector<1x128xf32> to vector<2x128xf32>
    %207 = arith.mulf %205, %206 : vector<2x128xf32>
    %208 = vector.broadcast %204 : vector<1x128xf32> to vector<2x128xf32>
    %209 = arith.mulf %201, %208 : vector<2x128xf32>
    %210 = arith.subf %207, %209 : vector<2x128xf32>
    %211 = arith.addf %193, %210 : vector<2x128xf32>
    %212 = vector.broadcast %203 : vector<1x128xf32> to vector<2x128xf32>
    %213 = arith.mulf %199, %212 : vector<2x128xf32>
    %214 = arith.addf %207, %213 : vector<2x128xf32>
    %215 = arith.addf %197, %214 : vector<2x128xf32>
    %c0_141 = arith.constant 0 : index
    %c3_142 = arith.constant 3 : index
    %c0_143 = arith.constant 0 : index
    %c0_144 = arith.constant 0 : index
    %216 = vector.load %arg2[%c0_141, %c3_142, %c0_143, %c0_144] : memref<2x4x2x128xf32, #tpu.memory_space<vmem>>, vector<1x1x2x128xf32>
    %217 = vector.shape_cast %216 : vector<1x1x2x128xf32> to vector<2x128xf32>
    %c1_145 = arith.constant 1 : index
    %c3_146 = arith.constant 3 : index
    %c0_147 = arith.constant 0 : index
    %c0_148 = arith.constant 0 : index
    %218 = vector.load %arg2[%c1_145, %c3_146, %c0_147, %c0_148] : memref<2x4x2x128xf32, #tpu.memory_space<vmem>>, vector<1x1x2x128xf32>
    %219 = vector.shape_cast %218 : vector<1x1x2x128xf32> to vector<2x128xf32>
    %c14 = arith.constant 14 : index
    %c0_149 = arith.constant 0 : index
    %220 = vector.load %arg3[%c14, %c0_149] : memref<48x128xf32, #tpu.memory_space<vmem>>, vector<1x128xf32>
    %c30 = arith.constant 30 : index
    %c0_150 = arith.constant 0 : index
    %221 = vector.load %arg3[%c30, %c0_150] : memref<48x128xf32, #tpu.memory_space<vmem>>, vector<1x128xf32>
    %c46 = arith.constant 46 : index
    %c0_151 = arith.constant 0 : index
    %222 = vector.load %arg3[%c46, %c0_151] : memref<48x128xf32, #tpu.memory_space<vmem>>, vector<1x128xf32>
    %223 = arith.addf %217, %219 : vector<2x128xf32>
    %224 = vector.broadcast %220 : vector<1x128xf32> to vector<2x128xf32>
    %225 = arith.mulf %223, %224 : vector<2x128xf32>
    %226 = vector.broadcast %222 : vector<1x128xf32> to vector<2x128xf32>
    %227 = arith.mulf %219, %226 : vector<2x128xf32>
    %228 = arith.subf %225, %227 : vector<2x128xf32>
    %229 = arith.addf %211, %228 : vector<2x128xf32>
    %230 = vector.broadcast %221 : vector<1x128xf32> to vector<2x128xf32>
    %231 = arith.mulf %217, %230 : vector<2x128xf32>
    %232 = arith.addf %225, %231 : vector<2x128xf32>
    %233 = arith.addf %215, %232 : vector<2x128xf32>
    %c0_152 = arith.constant 0 : index
    %c2_153 = arith.constant 2 : index
    %c0_154 = arith.constant 0 : index
    %c0_155 = arith.constant 0 : index
    %234 = vector.load %arg4[%c0_152, %c2_153, %c0_154, %c0_155] : memref<2x4x2x128xf32, #tpu.memory_space<vmem>>, vector<1x1x2x128xf32>
    %235 = vector.shape_cast %234 : vector<1x1x2x128xf32> to vector<2x128xf32>
    %236 = vector.shape_cast %229 : vector<2x128xf32> to vector<1x1x2x128xf32>
    tpu.vector_store %arg4[%c0_152, %c2_153, %c0_154, %c0_155], %236 {strides = array<i32>} : memref<2x4x2x128xf32, #tpu.memory_space<vmem>>, vector<1x1x2x128xf32>,
    %c1_156 = arith.constant 1 : index
    %c2_157 = arith.constant 2 : index
    %c0_158 = arith.constant 0 : index
    %c0_159 = arith.constant 0 : index
    %237 = vector.load %arg4[%c1_156, %c2_157, %c0_158, %c0_159] : memref<2x4x2x128xf32, #tpu.memory_space<vmem>>, vector<1x1x2x128xf32>
    %238 = vector.shape_cast %237 : vector<1x1x2x128xf32> to vector<2x128xf32>
    %239 = vector.shape_cast %233 : vector<2x128xf32> to vector<1x1x2x128xf32>
    tpu.vector_store %arg4[%c1_156, %c2_157, %c0_158, %c0_159], %239 {strides = array<i32>} : memref<2x4x2x128xf32, #tpu.memory_space<vmem>>, vector<1x1x2x128xf32>,
    %cst_160 = arith.constant 0.000000e+00 : f32
    %240 = vector.broadcast %cst_160 : f32 to vector<2x128xf32>
    %cst_161 = arith.constant 0.000000e+00 : f32
    %241 = vector.broadcast %cst_161 : f32 to vector<2x128xf32>
    %c0_162 = arith.constant 0 : index
    %c0_163 = arith.constant 0 : index
    %c0_164 = arith.constant 0 : index
    %c0_165 = arith.constant 0 : index
    %242 = vector.load %arg2[%c0_162, %c0_163, %c0_164, %c0_165] : memref<2x4x2x128xf32, #tpu.memory_space<vmem>>, vector<1x1x2x128xf32>
    %243 = vector.shape_cast %242 : vector<1x1x2x128xf32> to vector<2x128xf32>
    %c1_166 = arith.constant 1 : index
    %c0_167 = arith.constant 0 : index
    %c0_168 = arith.constant 0 : index
    %c0_169 = arith.constant 0 : index
    %244 = vector.load %arg2[%c1_166, %c0_167, %c0_168, %c0_169] : memref<2x4x2x128xf32, #tpu.memory_space<vmem>>, vector<1x1x2x128xf32>
    %245 = vector.shape_cast %244 : vector<1x1x2x128xf32> to vector<2x128xf32>
    %c3_170 = arith.constant 3 : index
    %c0_171 = arith.constant 0 : index
    %246 = vector.load %arg3[%c3_170, %c0_171] : memref<48x128xf32, #tpu.memory_space<vmem>>, vector<1x128xf32>
    %c19 = arith.constant 19 : index
    %c0_172 = arith.constant 0 : index
    %247 = vector.load %arg3[%c19, %c0_172] : memref<48x128xf32, #tpu.memory_space<vmem>>, vector<1x128xf32>
    %c35 = arith.constant 35 : index
    %c0_173 = arith.constant 0 : index
    %248 = vector.load %arg3[%c35, %c0_173] : memref<48x128xf32, #tpu.memory_space<vmem>>, vector<1x128xf32>
    %249 = arith.addf %243, %245 : vector<2x128xf32>
    %250 = vector.broadcast %246 : vector<1x128xf32> to vector<2x128xf32>
    %251 = arith.mulf %249, %250 : vector<2x128xf32>
    %252 = vector.broadcast %248 : vector<1x128xf32> to vector<2x128xf32>
    %253 = arith.mulf %245, %252 : vector<2x128xf32>
    %254 = arith.subf %251, %253 : vector<2x128xf32>
    %255 = arith.addf %240, %254 : vector<2x128xf32>
    %256 = vector.broadcast %247 : vector<1x128xf32> to vector<2x128xf32>
    %257 = arith.mulf %243, %256 : vector<2x128xf32>
    %258 = arith.addf %251, %257 : vector<2x128xf32>
    %259 = arith.addf %241, %258 : vector<2x128xf32>
    %c0_174 = arith.constant 0 : index
    %c1_175 = arith.constant 1 : index
    %c0_176 = arith.constant 0 : index
    %c0_177 = arith.constant 0 : index
    %260 = vector.load %arg2[%c0_174, %c1_175, %c0_176, %c0_177] : memref<2x4x2x128xf32, #tpu.memory_space<vmem>>, vector<1x1x2x128xf32>
    %261 = vector.shape_cast %260 : vector<1x1x2x128xf32> to vector<2x128xf32>
    %c1_178 = arith.constant 1 : index
    %c1_179 = arith.constant 1 : index
    %c0_180 = arith.constant 0 : index
    %c0_181 = arith.constant 0 : index
    %262 = vector.load %arg2[%c1_178, %c1_179, %c0_180, %c0_181] : memref<2x4x2x128xf32, #tpu.memory_space<vmem>>, vector<1x1x2x128xf32>
    %263 = vector.shape_cast %262 : vector<1x1x2x128xf32> to vector<2x128xf32>
    %c7 = arith.constant 7 : index
    %c0_182 = arith.constant 0 : index
    %264 = vector.load %arg3[%c7, %c0_182] : memref<48x128xf32, #tpu.memory_space<vmem>>, vector<1x128xf32>
    %c23 = arith.constant 23 : index
    %c0_183 = arith.constant 0 : index
    %265 = vector.load %arg3[%c23, %c0_183] : memref<48x128xf32, #tpu.memory_space<vmem>>, vector<1x128xf32>
    %c39 = arith.constant 39 : index
    %c0_184 = arith.constant 0 : index
    %266 = vector.load %arg3[%c39, %c0_184] : memref<48x128xf32, #tpu.memory_space<vmem>>, vector<1x128xf32>
    %267 = arith.addf %261, %263 : vector<2x128xf32>
    %268 = vector.broadcast %264 : vector<1x128xf32> to vector<2x128xf32>
    %269 = arith.mulf %267, %268 : vector<2x128xf32>
    %270 = vector.broadcast %266 : vector<1x128xf32> to vector<2x128xf32>
    %271 = arith.mulf %263, %270 : vector<2x128xf32>
    %272 = arith.subf %269, %271 : vector<2x128xf32>
    %273 = arith.addf %255, %272 : vector<2x128xf32>
    %274 = vector.broadcast %265 : vector<1x128xf32> to vector<2x128xf32>
    %275 = arith.mulf %261, %274 : vector<2x128xf32>
    %276 = arith.addf %269, %275 : vector<2x128xf32>
    %277 = arith.addf %259, %276 : vector<2x128xf32>
    %c0_185 = arith.constant 0 : index
    %c2_186 = arith.constant 2 : index
    %c0_187 = arith.constant 0 : index
    %c0_188 = arith.constant 0 : index
    %278 = vector.load %arg2[%c0_185, %c2_186, %c0_187, %c0_188] : memref<2x4x2x128xf32, #tpu.memory_space<vmem>>, vector<1x1x2x128xf32>
    %279 = vector.shape_cast %278 : vector<1x1x2x128xf32> to vector<2x128xf32>
    %c1_189 = arith.constant 1 : index
    %c2_190 = arith.constant 2 : index
    %c0_191 = arith.constant 0 : index
    %c0_192 = arith.constant 0 : index
    %280 = vector.load %arg2[%c1_189, %c2_190, %c0_191, %c0_192] : memref<2x4x2x128xf32, #tpu.memory_space<vmem>>, vector<1x1x2x128xf32>
    %281 = vector.shape_cast %280 : vector<1x1x2x128xf32> to vector<2x128xf32>
    %c11 = arith.constant 11 : index
    %c0_193 = arith.constant 0 : index
    %282 = vector.load %arg3[%c11, %c0_193] : memref<48x128xf32, #tpu.memory_space<vmem>>, vector<1x128xf32>
    %c27 = arith.constant 27 : index
    %c0_194 = arith.constant 0 : index
    %283 = vector.load %arg3[%c27, %c0_194] : memref<48x128xf32, #tpu.memory_space<vmem>>, vector<1x128xf32>
    %c43 = arith.constant 43 : index
    %c0_195 = arith.constant 0 : index
    %284 = vector.load %arg3[%c43, %c0_195] : memref<48x128xf32, #tpu.memory_space<vmem>>, vector<1x128xf32>
    %285 = arith.addf %279, %281 : vector<2x128xf32>
    %286 = vector.broadcast %282 : vector<1x128xf32> to vector<2x128xf32>
    %287 = arith.mulf %285, %286 : vector<2x128xf32>
    %288 = vector.broadcast %284 : vector<1x128xf32> to vector<2x128xf32>
    %289 = arith.mulf %281, %288 : vector<2x128xf32>
    %290 = arith.subf %287, %289 : vector<2x128xf32>
    %291 = arith.addf %273, %290 : vector<2x128xf32>
    %292 = vector.broadcast %283 : vector<1x128xf32> to vector<2x128xf32>
    %293 = arith.mulf %279, %292 : vector<2x128xf32>
    %294 = arith.addf %287, %293 : vector<2x128xf32>
    %295 = arith.addf %277, %294 : vector<2x128xf32>
    %c0_196 = arith.constant 0 : index
    %c3_197 = arith.constant 3 : index
    %c0_198 = arith.constant 0 : index
    %c0_199 = arith.constant 0 : index
    %296 = vector.load %arg2[%c0_196, %c3_197, %c0_198, %c0_199] : memref<2x4x2x128xf32, #tpu.memory_space<vmem>>, vector<1x1x2x128xf32>
    %297 = vector.shape_cast %296 : vector<1x1x2x128xf32> to vector<2x128xf32>
    %c1_200 = arith.constant 1 : index
    %c3_201 = arith.constant 3 : index
    %c0_202 = arith.constant 0 : index
    %c0_203 = arith.constant 0 : index
    %298 = vector.load %arg2[%c1_200, %c3_201, %c0_202, %c0_203] : memref<2x4x2x128xf32, #tpu.memory_space<vmem>>, vector<1x1x2x128xf32>
    %299 = vector.shape_cast %298 : vector<1x1x2x128xf32> to vector<2x128xf32>
    %c15 = arith.constant 15 : index
    %c0_204 = arith.constant 0 : index
    %300 = vector.load %arg3[%c15, %c0_204] : memref<48x128xf32, #tpu.memory_space<vmem>>, vector<1x128xf32>
    %c31 = arith.constant 31 : index
    %c0_205 = arith.constant 0 : index
    %301 = vector.load %arg3[%c31, %c0_205] : memref<48x128xf32, #tpu.memory_space<vmem>>, vector<1x128xf32>
    %c47 = arith.constant 47 : index
    %c0_206 = arith.constant 0 : index
    %302 = vector.load %arg3[%c47, %c0_206] : memref<48x128xf32, #tpu.memory_space<vmem>>, vector<1x128xf32>
    %303 = arith.addf %297, %299 : vector<2x128xf32>
    %304 = vector.broadcast %300 : vector<1x128xf32> to vector<2x128xf32>
    %305 = arith.mulf %303, %304 : vector<2x128xf32>
    %306 = vector.broadcast %302 : vector<1x128xf32> to vector<2x128xf32>
    %307 = arith.mulf %299, %306 : vector<2x128xf32>
    %308 = arith.subf %305, %307 : vector<2x128xf32>
    %309 = arith.addf %291, %308 : vector<2x128xf32>
    %310 = vector.broadcast %301 : vector<1x128xf32> to vector<2x128xf32>
    %311 = arith.mulf %297, %310 : vector<2x128xf32>
    %312 = arith.addf %305, %311 : vector<2x128xf32>
    %313 = arith.addf %295, %312 : vector<2x128xf32>
    %c0_207 = arith.constant 0 : index
    %c3_208 = arith.constant 3 : index
    %c0_209 = arith.constant 0 : index
    %c0_210 = arith.constant 0 : index
    %314 = vector.load %arg4[%c0_207, %c3_208, %c0_209, %c0_210] : memref<2x4x2x128xf32, #tpu.memory_space<vmem>>, vector<1x1x2x128xf32>
    %315 = vector.shape_cast %314 : vector<1x1x2x128xf32> to vector<2x128xf32>
    %316 = vector.shape_cast %309 : vector<2x128xf32> to vector<1x1x2x128xf32>
    tpu.vector_store %arg4[%c0_207, %c3_208, %c0_209, %c0_210], %316 {strides = array<i32>} : memref<2x4x2x128xf32, #tpu.memory_space<vmem>>, vector<1x1x2x128xf32>,
    %c1_211 = arith.constant 1 : index
    %c3_212 = arith.constant 3 : index
    %c0_213 = arith.constant 0 : index
    %c0_214 = arith.constant 0 : index
    %317 = vector.load %arg4[%c1_211, %c3_212, %c0_213, %c0_214] : memref<2x4x2x128xf32, #tpu.memory_space<vmem>>, vector<1x1x2x128xf32>
    %318 = vector.shape_cast %317 : vector<1x1x2x128xf32> to vector<2x128xf32>
    %319 = vector.shape_cast %313 : vector<2x128xf32> to vector<1x1x2x128xf32>
    tpu.vector_store %arg4[%c1_211, %c3_212, %c0_213, %c0_214], %319 {strides = array<i32>} : memref<2x4x2x128xf32, #tpu.memory_space<vmem>>, vector<1x1x2x128xf32>,
    return
  }
  func.func @transform_0(%arg0: i32, %arg1: i32) -> (i32, i32, i32, i32) {
    %c0_i32 = arith.constant 0 : i32
    %c0_i32_0 = arith.constant 0 : i32
    %c0_i32_1 = arith.constant 0 : i32
    return %c0_i32, %c0_i32_0, %arg1, %arg0 : i32, i32, i32, i32
  }
  func.func @transform_1(%arg0: i32, %arg1: i32) -> (i32, i32) {
    %c0_i32 = arith.constant 0 : i32
    %c0_i32_0 = arith.constant 0 : i32
    return %c0_i32, %arg0 : i32, i32
  }
  func.func @transform_2(%arg0: i32, %arg1: i32) -> (i32, i32, i32, i32) {
    %c0_i32 = arith.constant 0 : i32
    %c0_i32_0 = arith.constant 0 : i32
    %c0_i32_1 = arith.constant 0 : i32
    return %c0_i32, %c0_i32_0, %arg1, %arg0 : i32, i32, i32, i32
  }
}

</mosaic_0001>

<bundles_post_ra>
// kernel: custom-call
= control target key start
LH: loop header
LB: loop body
LE: loop exit
PB: predicated region body
PF: predicated region fallthrough
CT: control target
= control target key end

     0   :  { %2 = vsyncpa [#allocation0], 0  ;;  %s61_s0 = inlined_call_operand.hbm [shape: c64[4,4,6,6], index: 0, kind: input, shape index: {}]   ;;  %s62_s1 = inlined_call_operand.vmem [shape: f32[4,4,6,6], index: 1, kind: output, shape index: {}]  }
   0x1   :  { %s3_s8 = sshll.u32 %s62_s1, 4  ;;  %s9_s11 = scalar_lea.hbm %s61_s0, 1536  ;;  %s4_s8 = int_to_ptr.vmem [resolvable:$true] %s3_s8 }
   0x2   :  { %p10_p0 = scmp.ne.s32.totalorder %s61_s0, %s9_s11  ;;  %s11_s16 = scalar_lea.hbm %s61_s0, 3072 }
   0x3   :  { %p12_p1 = scmp.lt.u32.totalorder %s11_s16, %s9_s11  ;;  %p13_p2 = scmp.lt.u32.totalorder %s9_s11, %s61_s0 }
   0x5   :  { %p14_p3 = por %p13_p2, %p12_p1 }
   0x7   :  { %p15_p4 = pnand %p14_p3, %p10_p0 }
   0x9   :  { %18 = shalt.err (!%p15_p4)  }
   0xa   :  { %s19_s1 = scalar_lea.vmem %s4_s8, 1536  ;;  %p24_p6 = scmp.lt.s32.totalorder %s4_s8, %s4_s8 }
   0xb   :  { %p20_p5 = scmp.ne.s32.totalorder %s4_s8, %s19_s1  ;;  %p25_p7 = scmp.lt.s32.totalorder %s19_s1, %s19_s1 }
   0xd   :  { %p26_p8 = por %p25_p7, %p24_p6 }
   0xf   :  { %p27_p9 = pnand %p26_p8, %p20_p5 }
  0x11   :  { %30 = shalt.err (!%p27_p9)  }
  0x12   :  { %6 = dma.hbm_to_vmem [thread:$0]  %s61_s0, 1536, %s4_s8, [#allocation0] }
  0x13   :  { %31 = dma.done.wait [#allocation0], 1536  }
  0x14   :  { %32 = vsyncadd [#allocation0], 4294965760 }
  0x15   :  { %8 = vsyncpa [#allocation0], 1 }

// kernel: custom-call.1
= control target key start
LH: loop header
LB: loop body
LE: loop exit
PB: predicated region body
PF: predicated region fallthrough
CT: control target
= control target key end

     0   :  { %s59_s0 = inlined_call_operand.hbm [shape: c64[4,4,6,6], index: 0, kind: input, shape index: {}]   ;;  %s60_s1 = inlined_call_operand.vmem [shape: f32[4,4,6,6], index: 1, kind: output, shape index: {}]  }
   0x1   :  { %s2_s8 = scalar_lea.hbm %s59_s0, 1536 }
   0x2   :  { %3 = vsyncpa [#allocation0], 0  ;;  %s4_s11 = sshll.u32 %s60_s1, 4  ;;  %s34_s14 = scalar_lea.hbm %s59_s0, 3072  ;;  %s5_s11 = int_to_ptr.vmem [resolvable:$true] %s4_s11 }
   0x3   :  { %p11_p0 = scmp.ne.s32.totalorder %s2_s8, %s34_s14  ;;  %p13_p1 = scmp.lt.u32.totalorder %s2_s8, %s59_s0 }
   0x4   :  { %p14_p2 = scmp.lt.u32.totalorder %s34_s14, %s34_s14  ;;  %p16_p4 = scmp.lt.u32.totalorder %s34_s14, %s2_s8 }
   0x6   :  { %p15_p3 = por %p14_p2, %p13_p1 }
   0x8   :  { %p17_p5 = por %p16_p4, %p15_p3 }
   0xa   :  { %p18_p6 = pnand %p17_p5, %p11_p0 }
   0xc   :  { %21 = shalt.err (!%p18_p6)  }
   0xd   :  { %s22_s17 = scalar_lea.vmem %s5_s11, 1536  ;;  %p27_p8 = scmp.lt.s32.totalorder %s5_s11, %s5_s11 }
   0xe   :  { %p23_p7 = scmp.ne.s32.totalorder %s5_s11, %s22_s17  ;;  %p28_p9 = scmp.lt.s32.totalorder %s22_s17, %s22_s17 }
  0x10   :  { %p29_p10 = por %p28_p9, %p27_p8 }
  0x12   :  { %p30_p11 = pnand %p29_p10, %p23_p7 }
  0x14   :  { %33 = shalt.err (!%p30_p11)  }
  0x15   :  { %7 = dma.hbm_to_vmem [thread:$0]  %s2_s8, 1536, %s5_s11, [#allocation0] }
  0x16   :  { %35 = dma.done.wait [#allocation0], 1536  }
  0x17   :  { %36 = vsyncadd [#allocation0], 4294965760 }
  0x18   :  { %9 = vsyncpa [#allocation0], 1 }

// kernel: reverse.0
= control target key start
LH: loop header
LB: loop body
LE: loop exit
PB: predicated region body
PF: predicated region fallthrough
CT: control target
= control target key end

     0   :  { %v71_v3 = vlaneseq  ;;  %v64_v9 = vld [vmem:[#allocation0 + $0x7] ss:$-1 sm:$0xff]  ;;  %v78_v12 = vld [vmem:[#allocation0 + $0x17] ss:$-1 sm:$0xff]  ;;  %s329_s0 = inlined_call_operand.vmem [shape: f32[2,4,16,7], index: 0, kind: input, shape index: {}]   ;;  %s330_s1 = inlined_call_operand.vmem [shape: f32[2,4,16,7], index: 1, kind: output, shape index: {}]  }
   0x1   :  { %v44_v0 = vld [vmem:[%s329_s0] sm:$0xff]  ;;  %v46_v1 = vld [vmem:[%s329_s0 + $0x8] sm:$0xff]  ;;  %v48_v2 = vld [vmem:[%s329_s0 + $0x10] sm:$0xff]  ;;  %v65_v10 = vrot.slane %v64_v9, 1  ;;  %v79_v14 = vrot.slane %v78_v12, 1 }
   0x2   :  { %45 = vst [vmem:[#allocation0 + $0x8] sm:$0xff] %v44_v0  ;;  %47 = vst [vmem:[#allocation0 + $0x18] sm:$0xff] %v46_v1  ;;  %v50_v4 = vld [vmem:[%s329_s0 + $0x18] sm:$0xff]  ;;  %v52_v5 = vld [vmem:[%s329_s0 + $0x20] sm:$0xff]  ;;  %v72_v11 = vshrl.u32 %v71_v3, 7 }
   0x3   :  { %49 = vst [vmem:[#allocation0 + $0x28] sm:$0xff] %v48_v2  ;;  %v54_v6 = vld [vmem:[%s329_s0 + $0x28] sm:$0xff]  ;;  %51 = vst [vmem:[#allocation0 + $0x38] sm:$0xff] %v50_v4  ;;  %v56_v7 = vld [vmem:[%s329_s0 + $0x30] sm:$0xff] }
   0x4   :  { %53 = vst [vmem:[#allocation0 + $0x48] sm:$0xff] %v52_v5  ;;  %55 = vst [vmem:[#allocation0 + $0x58] sm:$0xff] %v54_v6  ;;  %v58_v8 = vld [vmem:[%s329_s0 + $0x38] sm:$0xff]  ;;  %v92_v13 = vld [vmem:[#allocation0 + $0x27] ss:$-1 sm:$0xff]  ;;  %vm73_vm0 = vcmp.lt.s32.totalorder %v72_v11, 7 }
   0x5   :  { %57 = vst [vmem:[#allocation0 + $0x68] sm:$0xff] %v56_v7  ;;  %59 = vst [vmem:[#allocation0 + $0x78] sm:$0xff] %v58_v8  ;;  %v93_v15 = vrot.slane %v92_v13, 1  ;;  %v106_v16 = vld [vmem:[#allocation0 + $0x37] ss:$-1 sm:$0xff] }
   0x6   :  { %66 = vst [vmem:[#allocation1] sm:$0xff] %v65_v10  ;;  %v107_v17 = vrot.slane %v106_v16, 1  ;;  %v120_v18 = vld [vmem:[#allocation0 + $0x47] ss:$-1 sm:$0xff]  ;;  %v134_v19 = vld [vmem:[#allocation0 + $0x57] ss:$-1 sm:$0xff] }
   0x7   :  { %80 = vst [vmem:[#allocation1 + $0x8] sm:$0xff] %v79_v14  ;;  %94 = vst [vmem:[#allocation1 + $0x10] sm:$0xff] %v93_v15  ;;  %v121_v20 = vrot.slane %v120_v18, 1  ;;  %v135_v21 = vrot.slane %v134_v19, 1  ;;  %v148_v22 = vld [vmem:[#allocation0 + $0x67] ss:$-1 sm:$0xff] }
   0x8   :  { %v162_v23 = vld [vmem:[#allocation0 + $0x77] ss:$-1 sm:$0xff]  ;;  %108 = vst [vmem:[#allocation1 + $0x18] sm:$0xff] %v107_v17  ;;  %v149_v24 = vrot.slane %v148_v22, 1 }
   0x9   :  { %v163_v25 = vrot.slane %v162_v23, 1  ;;  %v69_v26 = vld [vmem:[#allocation0 + $0xf] ss:$-1 sm:$0xff]  ;;  %v83_v27 = vld [vmem:[#allocation0 + $0x1f] ss:$-1 sm:$0xff]  ;;  %122 = vst [vmem:[#allocation1 + $0x20] sm:$0xff] %v121_v20 }
   0xa   :  { %v97_v28 = vld [vmem:[#allocation0 + $0x2f] ss:$-1 sm:$0xff]  ;;  %136 = vst [vmem:[#allocation1 + $0x28] sm:$0xff] %v135_v21  ;;  %v70_v29 = vrot.slane %v69_v26, 1  ;;  %v84_v30 = vrot.slane %v83_v27, 1  ;;  %150 = vst [vmem:[#allocation1 + $0x30] sm:$0xff] %v149_v24 }
   0xb   :  { %v98_v31 = vrot.slane %v97_v28, 1  ;;  %v111_v32 = vld [vmem:[#allocation0 + $0x3f] ss:$-1 sm:$0xff]  ;;  %164 = vst [vmem:[#allocation1 + $0x38] sm:$0xff] %v163_v25  ;;  %v125_v34 = vld [vmem:[#allocation0 + $0x4f] ss:$-1 sm:$0xff] }
   0xc   :  { %v112_v33 = vrot.slane %v111_v32, 1  ;;  %v139_v35 = vld [vmem:[#allocation0 + $0x5f] ss:$-1 sm:$0xff]  ;;  %74 = vst.msk [vmem:[#allocation1] sm:$0xff] %vm73_vm0, %v70_v29  ;;  %88 = vst.msk [vmem:[#allocation1 + $0x8] sm:$0xff] %vm73_vm0, %v84_v30  ;;  %v126_v36 = vrot.slane %v125_v34, 1 }
   0xd   :  { %102 = vst.msk [vmem:[#allocation1 + $0x10] sm:$0xff] %vm73_vm0, %v98_v31  ;;  %v140_v37 = vrot.slane %v139_v35, 1  ;;  %v153_v38 = vld [vmem:[#allocation0 + $0x6f] ss:$-1 sm:$0xff]  ;;  %v167_v39 = vld [vmem:[#allocation0 + $0x7f] ss:$-1 sm:$0xff] }
   0xe   :  { %116 = vst.msk [vmem:[#allocation1 + $0x18] sm:$0xff] %vm73_vm0, %v112_v33  ;;  %v154_v40 = vrot.slane %v153_v38, 1  ;;  %v168_v41 = vrot.slane %v167_v39, 1  ;;  %130 = vst.msk [vmem:[#allocation1 + $0x20] sm:$0xff] %vm73_vm0, %v126_v36 }
   0xf   :  { %144 = vst.msk [vmem:[#allocation1 + $0x28] sm:$0xff] %vm73_vm0, %v140_v37 }
  0x10   :  { %158 = vst.msk [vmem:[#allocation1 + $0x30] sm:$0xff] %vm73_vm0, %v154_v40  ;;  %172 = vst.msk [vmem:[#allocation1 + $0x38] sm:$0xff] %vm73_vm0, %v168_v41 }
  0x13   :  { %v214_v42 = vld [vmem:[#allocation1] sm:$0xff]  ;;  %v216_v43 = vld [vmem:[#allocation1 + $0x8] sm:$0xff] }
  0x14   :  { %v218_v44 = vld [vmem:[#allocation1 + $0x10] sm:$0xff]  ;;  %215 = vst [vmem:[%s330_s1] sm:$0xff] %v214_v42  ;;  %217 = vst [vmem:[%s330_s1 + $0x8] sm:$0xff] %v216_v43 }
  0x15   :  { %219 = vst [vmem:[%s330_s1 + $0x10] sm:$0xff] %v218_v44  ;;  %v220_v45 = vld [vmem:[#allocation1 + $0x18] sm:$0xff]  ;;  %v222_v46 = vld [vmem:[#allocation1 + $0x20] sm:$0xff] }
  0x16   :  { %221 = vst [vmem:[%s330_s1 + $0x18] sm:$0xff] %v220_v45  ;;  %v224_v47 = vld [vmem:[#allocation1 + $0x28] sm:$0xff]  ;;  %223 = vst [vmem:[%s330_s1 + $0x20] sm:$0xff] %v222_v46 }
  0x17   :  { %225 = vst [vmem:[%s330_s1 + $0x28] sm:$0xff] %v224_v47  ;;  %v226_v48 = vld [vmem:[#allocation1 + $0x30] sm:$0xff]  ;;  %v228_v49 = vld [vmem:[#allocation1 + $0x38] sm:$0xff] }
  0x18   :  { %227 = vst [vmem:[%s330_s1 + $0x30] sm:$0xff] %v226_v48  ;;  %229 = vst [vmem:[%s330_s1 + $0x38] sm:$0xff] %v228_v49 }

// kernel: spectral_conv2d.1
= control target key start
LH: loop header
LB: loop body
LE: loop exit
PB: predicated region body
PF: predicated region fallthrough
CT: control target
= control target key end

     0   :  { %s799_s0 = inlined_call_operand.vmem [shape: f32[2,4,2,128], index: 0, kind: input, shape index: {}]   ;;  %s800_s1 = inlined_call_operand.vmem [shape: f32[48,128], index: 1, kind: input, shape index: {}]   ;;  %s801_s2 = inlined_call_operand.vmem [shape: f32[2,4,2,128], index: 2, kind: output, shape index: {}]  }
   0x1   :  { %v11_v0 = vld [vmem:[%s799_s0] sm:$0x3]  ;;  %v437_v1 = vld [vmem:[%s799_s0 + $0x8] sm:$0x3]  ;;  %v441_v5 = vld [vmem:[%s799_s0 + $0x2] sm:$0x3] }
   0x2   :  { %v438_v2 = vld [vmem:[%s800_s1] ss:$0 sm:$0xff]  ;;  %v17_v4 = vadd.f32 %v437_v1, %v11_v0  ;;  %v442_v6 = vld [vmem:[%s799_s0 + $0xa] sm:$0x3]  ;;  %v443_v8 = vld [vmem:[%s800_s1 + $0x4] ss:$0 sm:$0xff] }
   0x3   :  { %v439_v3 = vld [vmem:[%s800_s1 + $0x20] ss:$0 sm:$0xff]  ;;  %v444_v9 = vld [vmem:[%s800_s1 + $0x24] ss:$0 sm:$0xff]  ;;  %v44_v10 = vadd.f32 %v442_v6, %v441_v5  ;;  %v447_v14 = vld [vmem:[%s799_s0 + $0xc] sm:$0x3] }
   0x4   :  { %v27_v7 = vmul.f32 %v439_v3, %v437_v1  ;;  %v446_v11 = vld [vmem:[%s799_s0 + $0x4] sm:$0x3]  ;;  %v22_v12 = vmul.f32 %v438_v2, %v17_v4  ;;  %v54_v13 = vmul.f32 %v444_v9, %v442_v6  ;;  %v448_v15 = vld [vmem:[%s800_s1 + $0x8] ss:$0 sm:$0xff]  ;;  %v451_v20 = vld [vmem:[%s799_s0 + $0x6] sm:$0x3] }
   0x5   :  { %v449_v16 = vld [vmem:[%s800_s1 + $0x28] ss:$0 sm:$0xff]  ;;  %v49_v17 = vmul.f32 %v443_v8, %v44_v10  ;;  %v71_v18 = vadd.f32 %v447_v14, %v446_v11  ;;  %v452_v21 = vld [vmem:[%s799_s0 + $0xe] sm:$0x3]  ;;  %v453_v22 = vld [vmem:[%s800_s1 + $0xc] ss:$0 sm:$0xff] }
   0x6   :  { %v81_v19 = vmul.f32 %v449_v16, %v447_v14  ;;  %v28_v23 = vsub.f32 %v22_v12, %v27_v7  ;;  %v454_v24 = vld [vmem:[%s800_s1 + $0x2c] ss:$0 sm:$0xff]  ;;  %v98_v25 = vadd.f32 %v452_v21, %v451_v20  ;;  %v440_v26 = vld [vmem:[%s800_s1 + $0x10] ss:$0 sm:$0xff]  ;;  %v445_v27 = vld [vmem:[%s800_s1 + $0x14] ss:$0 sm:$0xff] }
   0x7   :  { %v55_v28 = vsub.f32 %v49_v17, %v54_v13  ;;  %v76_v29 = vmul.f32 %v448_v15, %v71_v18  ;;  %v108_v30 = vmul.f32 %v454_v24, %v452_v21  ;;  %v34_v31 = vmul.f32 %v440_v26, %v11_v0  ;;  %v450_v32 = vld [vmem:[%s800_s1 + $0x18] ss:$0 sm:$0xff]  ;;  %v455_v33 = vld [vmem:[%s800_s1 + $0x1c] ss:$0 sm:$0xff]  ;;  %v121_v34 = vld [vmem:[%s799_s0] sm:$0x3] }
   0x8   :  { %v103_v35 = vmul.f32 %v453_v22, %v98_v25  ;;  %v61_v36 = vmul.f32 %v445_v27, %v441_v5  ;;  %v88_v37 = vmul.f32 %v450_v32, %v446_v11  ;;  %v115_v38 = vmul.f32 %v455_v33, %v451_v20  ;;  %v457_v39 = vld [vmem:[%s799_s0 + $0x8] sm:$0x3]  ;;  %v458_v40 = vld [vmem:[%s800_s1 + $0x1] ss:$0 sm:$0xff]  ;;  %v461_v46 = vld [vmem:[%s799_s0 + $0x2] sm:$0x3] }
   0x9   :  { %v459_v41 = vld [vmem:[%s800_s1 + $0x21] ss:$0 sm:$0xff]  ;;  %v56_v42 = vadd.f32 %v55_v28, %v28_v23  ;;  %v82_v43 = vsub.f32 %v76_v29, %v81_v19  ;;  %v35_v44 = vadd.f32 %v34_v31, %v22_v12  ;;  %v126_v45 = vadd.f32 %v457_v39, %v121_v34  ;;  %v462_v47 = vld [vmem:[%s799_s0 + $0xa] sm:$0x3]  ;;  %v463_v48 = vld [vmem:[%s800_s1 + $0x5] ss:$0 sm:$0xff] }
   0xa   :  { %v109_v49 = vsub.f32 %v103_v35, %v108_v30  ;;  %v62_v50 = vadd.f32 %v61_v36, %v49_v17  ;;  %v89_v51 = vadd.f32 %v88_v37, %v76_v29  ;;  %v116_v52 = vadd.f32 %v115_v38, %v103_v35  ;;  %v464_v53 = vld [vmem:[%s800_s1 + $0x25] ss:$0 sm:$0xff]  ;;  %v467_v55 = vld [vmem:[%s799_s0 + $0xc] sm:$0x3]  ;;  %v468_v60 = vld [vmem:[%s800_s1 + $0x9] ss:$0 sm:$0xff] }
   0xb   :  { %v466_v54 = vld [vmem:[%s799_s0 + $0x4] sm:$0x3]  ;;  %v83_v56 = vadd.f32 %v82_v43, %v56_v42  ;;  %v131_v57 = vmul.f32 %v458_v40, %v126_v45  ;;  %v136_v58 = vmul.f32 %v459_v41, %v457_v39  ;;  %v151_v59 = vadd.f32 %v462_v47, %v461_v46  ;;  %v469_v61 = vld [vmem:[%s800_s1 + $0x29] ss:$0 sm:$0xff]  ;;  %v471_v62 = vld [vmem:[%s799_s0 + $0x6] sm:$0x3] }
   0xc   :  { %v63_v63 = vadd.f32 %v62_v50, %v35_v44  ;;  %v161_v0 = vmul.f32 %v464_v53, %v462_v47  ;;  %v176_v1 = vadd.f32 %v467_v55, %v466_v54  ;;  %v186_v2 = vmul.f32 %v469_v61, %v467_v55  ;;  %v472_v3 = vld [vmem:[%s799_s0 + $0xe] sm:$0x3]  ;;  %v473_v4 = vld [vmem:[%s800_s1 + $0xd] ss:$0 sm:$0xff]  ;;  %v460_v10 = vld [vmem:[%s800_s1 + $0x11] ss:$0 sm:$0xff] }
   0xd   :  { %v474_v5 = vld [vmem:[%s800_s1 + $0x2d] ss:$0 sm:$0xff]  ;;  %v110_v6 = vadd.f32 %v109_v49, %v83_v56  ;;  %v137_v7 = vsub.f32 %v131_v57, %v136_v58  ;;  %v156_v8 = vmul.f32 %v463_v48, %v151_v59  ;;  %v201_v9 = vadd.f32 %v472_v3, %v471_v62  ;;  %v465_v11 = vld [vmem:[%s800_s1 + $0x15] ss:$0 sm:$0xff]  ;;  %v470_v12 = vld [vmem:[%s800_s1 + $0x19] ss:$0 sm:$0xff] }
   0xe   :  { %v90_v13 = vadd.f32 %v89_v51, %v63_v63  ;;  %v181_v14 = vmul.f32 %v468_v60, %v176_v1  ;;  %v211_v15 = vmul.f32 %v474_v5, %v472_v3  ;;  %v143_v16 = vmul.f32 %v460_v10, %v121_v34  ;;  %v475_v17 = vld [vmem:[%s800_s1 + $0x1d] ss:$0 sm:$0xff]  ;;  %v225_v18 = vld [vmem:[%s799_s0] sm:$0x3]  ;;  %v478_v19 = vld [vmem:[%s799_s0 + $0x8] sm:$0x3] }
   0xf   :  { %118 = vst [vmem:[%s801_s2] sm:$0x3] %v110_v6  ;;  %v162_v20 = vsub.f32 %v156_v8, %v161_v0  ;;  %v206_v21 = vmul.f32 %v473_v4, %v201_v9  ;;  %v168_v22 = vmul.f32 %v465_v11, %v461_v46  ;;  %v193_v23 = vmul.f32 %v470_v12, %v466_v54  ;;  %v479_v24 = vld [vmem:[%s800_s1 + $0x2] ss:$0 sm:$0xff]  ;;  %v483_v31 = vld [vmem:[%s799_s0 + $0xa] sm:$0x3] }
  0x10   :  { %v480_v25 = vld [vmem:[%s800_s1 + $0x22] ss:$0 sm:$0xff]  ;;  %v117_v27 = vadd.f32 %v116_v52, %v90_v13  ;;  %v187_v28 = vsub.f32 %v181_v14, %v186_v2  ;;  %v144_v29 = vadd.f32 %v143_v16, %v131_v57  ;;  %v218_v30 = vmul.f32 %v475_v17, %v471_v62  ;;  %v484_v32 = vld [vmem:[%s800_s1 + $0x6] ss:$0 sm:$0xff]  ;;  %v487_v38 = vld [vmem:[%s799_s0 + $0x4] sm:$0x3] }
  0x11   :  { %v482_v26 = vld [vmem:[%s799_s0 + $0x2] sm:$0x3]  ;;  %v485_v33 = vld [vmem:[%s800_s1 + $0x26] ss:$0 sm:$0xff]  ;;  %v163_v34 = vadd.f32 %v162_v20, %v137_v7  ;;  %v212_v35 = vsub.f32 %v206_v21, %v211_v15  ;;  %v169_v36 = vadd.f32 %v168_v22, %v156_v8  ;;  %v194_v37 = vadd.f32 %v193_v23, %v181_v14  ;;  %v488_v39 = vld [vmem:[%s799_s0 + $0xc] sm:$0x3] }
  0x12   :  { %v489_v40 = vld [vmem:[%s800_s1 + $0xa] ss:$0 sm:$0xff]  ;;  %456 = vst [vmem:[%s801_s2 + $0x8] sm:$0x3] %v117_v27  ;;  %v219_v41 = vadd.f32 %v218_v30, %v206_v21  ;;  %v230_v42 = vadd.f32 %v478_v19, %v225_v18  ;;  %v240_v43 = vmul.f32 %v480_v25, %v478_v19  ;;  %v255_v44 = vadd.f32 %v483_v31, %v482_v26  ;;  %v492_v46 = vld [vmem:[%s799_s0 + $0x6] sm:$0x3] }
  0x13   :  { %v490_v45 = vld [vmem:[%s800_s1 + $0x2a] ss:$0 sm:$0xff]  ;;  %v493_v47 = vld [vmem:[%s799_s0 + $0xe] sm:$0x3]  ;;  %v188_v48 = vadd.f32 %v187_v28, %v163_v34  ;;  %v170_v49 = vadd.f32 %v169_v36, %v144_v29  ;;  %v265_v50 = vmul.f32 %v485_v33, %v483_v31  ;;  %v280_v51 = vadd.f32 %v488_v39, %v487_v38  ;;  %v481_v54 = vld [vmem:[%s800_s1 + $0x12] ss:$0 sm:$0xff] }
  0x14   :  { %v494_v52 = vld [vmem:[%s800_s1 + $0xe] ss:$0 sm:$0xff]  ;;  %v235_v55 = vmul.f32 %v479_v24, %v230_v42  ;;  %v260_v56 = vmul.f32 %v484_v32, %v255_v44  ;;  %v290_v57 = vmul.f32 %v490_v45, %v488_v39  ;;  %v305_v58 = vadd.f32 %v493_v47, %v492_v46  ;;  %v486_v59 = vld [vmem:[%s800_s1 + $0x16] ss:$0 sm:$0xff]  ;;  %v491_v60 = vld [vmem:[%s800_s1 + $0x1a] ss:$0 sm:$0xff] }
  0x15   :  { %v495_v53 = vld [vmem:[%s800_s1 + $0x2e] ss:$0 sm:$0xff]  ;;  %v213_v61 = vadd.f32 %v212_v35, %v188_v48  ;;  %v195_v62 = vadd.f32 %v194_v37, %v170_v49  ;;  %v285_v63 = vmul.f32 %v489_v40, %v280_v51  ;;  %v496_v1 = vld [vmem:[%s800_s1 + $0x1e] ss:$0 sm:$0xff]  ;;  %v329_v2 = vld [vmem:[%s799_s0] sm:$0x3]  ;;  %v247_v6 = vmul.f32 %v481_v54, %v225_v18 }
  0x16   :  { %v315_v0 = vmul.f32 %v495_v53, %v493_v47  ;;  %v241_v3 = vsub.f32 %v235_v55, %v240_v43  ;;  %v266_v4 = vsub.f32 %v260_v56, %v265_v50  ;;  %v310_v5 = vmul.f32 %v494_v52, %v305_v58  ;;  %v499_v7 = vld [vmem:[%s799_s0 + $0x8] sm:$0x3]  ;;  %v500_v8 = vld [vmem:[%s800_s1 + $0x3] ss:$0 sm:$0xff]  ;;  %v504_v15 = vld [vmem:[%s799_s0 + $0xa] sm:$0x3] }
  0x17   :  { %v501_v9 = vld [vmem:[%s800_s1 + $0x23] ss:$0 sm:$0xff]  ;;  %476 = vst [vmem:[%s801_s2 + $0x2] sm:$0x3] %v213_v61  ;;  %v220_v10 = vadd.f32 %v219_v41, %v195_v62  ;;  %v291_v11 = vsub.f32 %v285_v63, %v290_v57  ;;  %v272_v12 = vmul.f32 %v486_v59, %v482_v26  ;;  %v297_v13 = vmul.f32 %v491_v60, %v487_v38  ;;  %v506_v16 = vld [vmem:[%s800_s1 + $0x27] ss:$0 sm:$0xff] }
  0x18   :  { %v503_v14 = vld [vmem:[%s799_s0 + $0x2] sm:$0x3]  ;;  %v267_v17 = vadd.f32 %v266_v4, %v241_v3  ;;  %v316_v18 = vsub.f32 %v310_v5, %v315_v0  ;;  %v248_v19 = vadd.f32 %v247_v6, %v235_v55  ;;  %v322_v20 = vmul.f32 %v496_v1, %v492_v46  ;;  %v508_v21 = vld [vmem:[%s799_s0 + $0x4] sm:$0x3]  ;;  %v509_v22 = vld [vmem:[%s799_s0 + $0xc] sm:$0x3] }
  0x19   :  { %v511_v23 = vld [vmem:[%s800_s1 + $0x2b] ss:$0 sm:$0xff]  ;;  %477 = vst [vmem:[%s801_s2 + $0xa] sm:$0x3] %v220_v10  ;;  %v273_v24 = vadd.f32 %v272_v12, %v260_v56  ;;  %v298_v25 = vadd.f32 %v297_v13, %v285_v63  ;;  %v334_v26 = vadd.f32 %v499_v7, %v329_v2  ;;  %v344_v27 = vmul.f32 %v501_v9, %v499_v7  ;;  %v505_v28 = vld [vmem:[%s800_s1 + $0x7] ss:$0 sm:$0xff] }
  0x1a   :  { %v513_v29 = vld [vmem:[%s799_s0 + $0x6] sm:$0x3]  ;;  %v514_v30 = vld [vmem:[%s799_s0 + $0xe] sm:$0x3]  ;;  %v292_v31 = vadd.f32 %v291_v11, %v267_v17  ;;  %v323_v32 = vadd.f32 %v322_v20, %v310_v5  ;;  %v359_v33 = vadd.f32 %v504_v15, %v503_v14  ;;  %v369_v34 = vmul.f32 %v506_v16, %v504_v15  ;;  %v510_v35 = vld [vmem:[%s800_s1 + $0xb] ss:$0 sm:$0xff] }
  0x1b   :  { %v516_v36 = vld [vmem:[%s800_s1 + $0x2f] ss:$0 sm:$0xff]  ;;  %v502_v37 = vld [vmem:[%s800_s1 + $0x13] ss:$0 sm:$0xff]  ;;  %v274_v38 = vadd.f32 %v273_v24, %v248_v19  ;;  %v339_v39 = vmul.f32 %v500_v8, %v334_v26  ;;  %v384_v40 = vadd.f32 %v509_v22, %v508_v21  ;;  %v394_v41 = vmul.f32 %v511_v23, %v509_v22  ;;  %v507_v43 = vld [vmem:[%s800_s1 + $0x17] ss:$0 sm:$0xff] }
  0x1c   :  { %v515_v42 = vld [vmem:[%s800_s1 + $0xf] ss:$0 sm:$0xff]  ;;  %v512_v44 = vld [vmem:[%s800_s1 + $0x1b] ss:$0 sm:$0xff]  ;;  %v317_v45 = vadd.f32 %v316_v18, %v292_v31  ;;  %v364_v46 = vmul.f32 %v505_v28, %v359_v33  ;;  %v409_v47 = vadd.f32 %v514_v30, %v513_v29  ;;  %v419_v48 = vmul.f32 %v516_v36, %v514_v30  ;;  %v517_v49 = vld [vmem:[%s800_s1 + $0x1f] ss:$0 sm:$0xff] }
  0x1d   :  { %v299_v50 = vadd.f32 %v298_v25, %v274_v38  ;;  %v345_v51 = vsub.f32 %v339_v39, %v344_v27  ;;  %v389_v52 = vmul.f32 %v510_v35, %v384_v40  ;;  %v351_v53 = vmul.f32 %v502_v37, %v329_v2 }
  0x1e   :  { %497 = vst [vmem:[%s801_s2 + $0x4] sm:$0x3] %v317_v45  ;;  %v370_v54 = vsub.f32 %v364_v46, %v369_v34  ;;  %v414_v55 = vmul.f32 %v515_v42, %v409_v47  ;;  %v376_v56 = vmul.f32 %v507_v43, %v503_v14  ;;  %v401_v57 = vmul.f32 %v512_v44, %v508_v21 }
  0x1f   :  { %v324_v58 = vadd.f32 %v323_v32, %v299_v50  ;;  %v395_v59 = vsub.f32 %v389_v52, %v394_v41  ;;  %v352_v60 = vadd.f32 %v351_v53, %v339_v39  ;;  %v426_v61 = vmul.f32 %v517_v49, %v513_v29 }
  0x20   :  { %v371_v62 = vadd.f32 %v370_v54, %v345_v51  ;;  %v420_v63 = vsub.f32 %v414_v55, %v419_v48  ;;  %v377_v0 = vadd.f32 %v376_v56, %v364_v46  ;;  %v402_v1 = vadd.f32 %v401_v57, %v389_v52 }
  0x21   :  { %498 = vst [vmem:[%s801_s2 + $0xc] sm:$0x3] %v324_v58  ;;  %v427_v4 = vadd.f32 %v426_v61, %v414_v55 }
  0x22   :  { %v396_v2 = vadd.f32 %v395_v59, %v371_v62  ;;  %v378_v3 = vadd.f32 %v377_v0, %v352_v60 }
  0x24   :  { %v421_v5 = vadd.f32 %v420_v63, %v396_v2  ;;  %v403_v6 = vadd.f32 %v402_v1, %v378_v3 }
  0x26   :  { %518 = vst [vmem:[%s801_s2 + $0x6] sm:$0x3] %v421_v5  ;;  %v428_v7 = vadd.f32 %v427_v4, %v403_v6 }
  0x28   :  { %519 = vst [vmem:[%s801_s2 + $0xe] sm:$0x3] %v428_v7 }

</bundles_post_ra>
